<compile_context>
chip_gen: v6e
topology: v6e:2x2x1
jax: 0.10.0
libtpu: 0.0.40
codegen_flags: <defaults>
</compile_context>

<pallas_src>
import functools

import jax
import jax.numpy as jnp
from jax.experimental import pallas as pl
from jax.experimental.pallas import tpu as pltpu

LANE = 128


def _round_up(x: int, m: int) -> int:
    return ((x + m - 1) // m) * m


def _neural_agg_kernel(bias_ref, feat_ref, w_ref, adj_ref, out_ref,
                       xw_ref, amax_ref, amin_ref, *,
                       n_valid_cols, tj, mask_tail, use_min):
    j = pl.program_id(1)

    @pl.when(j == 0)
    def _init():
        amax_ref[...] = jnp.full_like(amax_ref, -jnp.inf)
        if use_min:
            amin_ref[...] = jnp.full_like(amin_ref, jnp.inf)
        # Hoisted MXU matmul: computed once per node tile on the first j step
        # so it overlaps with the remaining adjacency DMAs of this node tile.
        xw_ref[...] = (jnp.dot(feat_ref[...], w_ref[...],
                               preferred_element_type=jnp.float32)
                       + bias_ref[0])

    # Adjacency tile; upcast after load so the reductions run in f32 on every
    # generation (v5e has no bf16 VALU) while HBM streams the narrow dtype.
    adj = adj_ref[...].astype(jnp.float32)                          # (TN, TJ)

    if mask_tail:
        col = j * tj + jax.lax.broadcasted_iota(jnp.int32, adj.shape, 1)
        valid = col < n_valid_cols
        adj_for_max = jnp.where(valid, adj, -jnp.inf)
        adj_for_min = jnp.where(valid, adj, jnp.inf)
    else:
        adj_for_max = adj
        adj_for_min = adj

    # Lane-dense running reducers: elementwise VPU max/min over 128-lane slabs;
    # the single cross-lane (XLU) reduce is deferred to the finalize step.
    n_slabs = tj // LANE
    run_max = amax_ref[...]
    for s in range(n_slabs):
        run_max = jnp.maximum(run_max, adj_for_max[:, s * LANE:(s + 1) * LANE])
    amax_ref[...] = run_max
    if use_min:
        run_min = amin_ref[...]
        for s in range(n_slabs):
            run_min = jnp.minimum(run_min,
                                  adj_for_min[:, s * LANE:(s + 1) * LANE])
        amin_ref[...] = run_min

    @pl.when(j == pl.num_programs(1) - 1)
    def _finalize():
        xw = xw_ref[...]
        a_max = jnp.max(amax_ref[...], axis=-1, keepdims=True)       # (TN, 1)
        agg = xw * a_max
        if use_min:
            a_min = jnp.min(amin_ref[...], axis=-1, keepdims=True)
            agg = jnp.maximum(agg, xw * a_min)
        # Clamp at 0: the reference aggregator starts from zeros.
        out_ref[...] = jnp.maximum(agg, 0.0).astype(out_ref.dtype)


def neural_aggregation(features, weights, adjacency, bias, *,
                       tn=256, tj=2048, adj_dtype=None,
                       assume_nonneg_adjacency=False):
    """features (N, D) f32, weights (D, D) f32, adjacency (N, N), bias scalar.

    adj_dtype: optionally stream adjacency in a narrower dtype (jnp.bfloat16 /
        jnp.int8).  Exact for 0/1 (or small-integer) graphs, otherwise it
        quantizes the edge weights — caller's choice.
    assume_nonneg_adjacency: drop the min-reduction path (valid iff A >= 0).
    """
    N, D = features.shape
    assert weights.shape == (D, D)
    assert adjacency.shape == (N, N)

    d_pad = _round_up(D, LANE)                  # lane-dense feature/output dim

    a = adjacency if adj_dtype is None else adjacency.astype(adj_dtype)
    adj_itemsize = jnp.dtype(a.dtype).itemsize
    sub = {4: 8, 2: 16, 1: 32}.get(adj_itemsize, 8)   # min sublane tile/dtype

    # Node tile: sublane-aligned; ensure >=2 blocks on the "parallel" axis
    # whenever N allows it so both v7x TensorCores get work.
    tn = _round_up(max(sub, min(tn, N)), sub)
    if pl.cdiv(N, tn) < 2 and N >= 2 * sub:
        tn = _round_up(pl.cdiv(N, 2), sub)
    # Neighbour tile: lane-aligned.
    tj = _round_up(max(LANE, min(tj, N)), LANE)

    grid = (pl.cdiv(N, tn), pl.cdiv(N, tj))
    mask_tail = (N % tj) != 0

    # Features / weights are O(N*D) / O(D^2): zero-padding D to a lane multiple
    # is cheap and keeps every load/store unmasked.  Zero K-columns add nothing
    # to the matmul, so this is exact.
    f = features.astype(jnp.float32)
    w = weights.astype(jnp.float32)
    if d_pad != D:
        f = jnp.zeros((N, d_pad), jnp.float32).at[:, :D].set(f)
        w = jnp.zeros((d_pad, d_pad), jnp.float32).at[:D, :D].set(w)
    bias_arr = jnp.asarray([bias], dtype=jnp.float32)
    # TODO(synk): for very large D, store weights/features in bf16 (MXU native)
    # and reduce the resident weight block's buffering.

    kernel = functools.partial(
        _neural_agg_kernel,
        n_valid_cols=N, tj=tj, mask_tail=mask_tail,
        use_min=not assume_nonneg_adjacency)

    # Scoped-VMEM budget (double-buffered blocks + scratch) with headroom,
    # capped at 64 MiB so a v6e-sized tiling never over-asks on v7x.
    vmem_need = (2 * tn * tj * adj_itemsize            # adjacency double-buffer
                 + 2 * tn * d_pad * 4                  # features
                 + 2 * d_pad * d_pad * 4               # weights (constant block)
                 + 2 * tn * d_pad * 4                  # output
                 + (tn * d_pad + 2 * tn * LANE) * 4    # scratch
                 + (2 << 20))
    vmem_limit = int(max(32 << 20, min(_round_up(vmem_need, 1 << 20), 64 << 20)))

    cost = pl.CostEstimate(
        flops=2 * N * D * D + 4 * N * N,
        transcendentals=0,
        bytes_accessed=N * N * adj_itemsize + (2 * N + d_pad) * d_pad * 4,
    )

    out = pl.pallas_call(
        kernel,
        out_shape=jax.ShapeDtypeStruct((N, d_pad), jnp.float32),
        grid=grid,
        in_specs=[
            pl.BlockSpec(memory_space=pltpu.MemorySpace.SMEM),     # bias scalar
            pl.BlockSpec((tn, d_pad), lambda i, j: (i, 0)),        # features tile
            pl.BlockSpec((d_pad, d_pad), lambda i, j: (0, 0)),     # weights resident
            pl.BlockSpec((tn, tj), lambda i, j: (i, j)),           # adjacency tile
        ],
        out_specs=pl.BlockSpec((tn, d_pad), lambda i, j: (i, 0)),
        scratch_shapes=[
            pltpu.VMEM((tn, d_pad), jnp.float32),  # feat @ W + bias, per node tile
            pltpu.VMEM((tn, LANE), jnp.float32),   # lane-dense running row-max(A)
            pltpu.VMEM((tn, LANE), jnp.float32),   # lane-dense running row-min(A)
        ],
        compiler_params=pltpu.CompilerParams(
            dimension_semantics=("parallel", "arbitrary"),
            vmem_limit_bytes=vmem_limit),
        cost_estimate=cost,
    )(bias_arr, f, w, a)

    return out[:, :D]


def _reference(features, weights, adjacency, bias):
    out = features @ weights + bias
    # returning[n,d] = max(0, max_j A[n,j] * out[n,d])
    prod = adjacency[:, :, None] * out[:, None, :]                 # (N, N, D)
    return jnp.maximum(jnp.max(prod, axis=1), 0.0)


if __name__ == "__main__":
    N, D = 200, 32          # nodes, dimension (module: weights are (D, D))
    bias = 0.25             # scalar bias, as in NeuralAggregation(dimension, bias)

    key = jax.random.PRNGKey(0)
    k_f, k_w, k_a = jax.random.split(key, 3)
    features = jax.random.normal(k_f, (N, D), dtype=jnp.float32)
    weights = jax.random.normal(k_w, (D, D), dtype=jnp.float32) * 0.1
    # binary neighbour matrix (dense adjacency row per node)
    adjacency = jax.random.bernoulli(k_a, p=0.4, shape=(N, N)).astype(jnp.float32)

    ref = _reference(features, weights, adjacency, bias)

    # 1) Defaults: unpadded adjacency stream, ragged column tail masked in-kernel.
    out = neural_aggregation(features, weights, adjacency, bias)
    jax.block_until_ready(out)
    assert out.shape == (N, D)
    assert jnp.allclose(out, ref, atol=5e-4, rtol=5e-4), "mismatch (default)"

    # 2) bf16 adjacency streaming (exact for this 0/1 graph) + A>=0 fast path.
    out_bf16 = neural_aggregation(features, weights, adjacency, bias,
                                  adj_dtype=jnp.bfloat16,
                                  assume_nonneg_adjacency=True)
    jax.block_until_ready(out_bf16)
    assert jnp.allclose(out_bf16, ref, atol=5e-4, rtol=5e-4), "mismatch (bf16)"

    # 3) Small tiles: multi-block node ("parallel") and neighbour ("arbitrary")
    #    grid axes plus the masked column tail (200 % 128 != 0).
    out_tiled = neural_aggregation(features, weights, adjacency, bias,
                                   tn=64, tj=128)
    jax.block_until_ready(out_tiled)
    assert jnp.allclose(out_tiled, ref, atol=5e-4, rtol=5e-4), "mismatch (tiled)"

    # 4) Signed (weighted) adjacency exercises the min-reduction path.
    adj_signed = jax.random.normal(jax.random.PRNGKey(1), (N, N),
                                   dtype=jnp.float32)
    ref_s = _reference(features, weights, adj_signed, bias)
    out_s = neural_aggregation(features, weights, adj_signed, bias)
    jax.block_until_ready(out_s)
    assert jnp.allclose(out_s, ref_s, atol=5e-4, rtol=5e-4), "mismatch (signed)"

    print("KERNEL_OK")
</pallas_src>

<mosaic_0001>
module attributes {stable_mosaic.version = 11 : i64} {
  func.func @_neural_agg_kernel(%arg0: i32, %arg1: i32, %arg2: memref<1xf32, #tpu.memory_space<smem>>, %arg3: memref<104x128xf32, #tpu.memory_space<vmem>>, %arg4: memref<128x128xf32, #tpu.memory_space<vmem>>, %arg5: memref<104x256xf32, #tpu.memory_space<vmem>>, %arg6: memref<104x128xf32, #tpu.memory_space<vmem>>, %arg7: memref<104x128xf32, #tpu.memory_space<vmem>>, %arg8: memref<104x128xf32, #tpu.memory_space<vmem>>, %arg9: memref<104x128xf32, #tpu.memory_space<vmem>>) attributes {dimension_semantics = [#tpu.dimension_semantics<parallel>, #tpu.dimension_semantics<arbitrary>], iteration_bounds = array<i64: 2, 1>, scalar_prefetch = 0 : i64, scratch_operands = 3 : i64, tpu.core_type = #tpu.core_type<tc>, window_params = [{transform_indices = @transform_0, window_bounds = array<i64: 1>}, {transform_indices = @transform_1, window_bounds = array<i64: 104, 128>}, {pipeline_mode = #tpu.pipeline_mode<synchronous>, transform_indices = @transform_2, window_bounds = array<i64: 128, 128>}, {transform_indices = @transform_3, window_bounds = array<i64: 104, 256>}, {transform_indices = @transform_4, window_bounds = array<i64: 104, 128>}]} {
    %c0_i32 = arith.constant 0 : i32
    %0 = arith.cmpi eq, %arg1, %c0_i32 : i32
    %1 = arith.extui %0 : i1 to i32
    %c0_i32_0 = arith.constant 0 : i32
    %2 = arith.cmpi ne, %1, %c0_i32_0 : i32
    scf.if %2 {
      %cst_13 = arith.constant 0xFF800000 : f32
      %29 = vector.broadcast %cst_13 : f32 to vector<104x128xf32>
      %c0_14 = arith.constant 0 : index
      %c0_15 = arith.constant 0 : index
      %30 = vector.load %arg8[%c0_14, %c0_15] : memref<104x128xf32, #tpu.memory_space<vmem>>, vector<104x128xf32>
      tpu.vector_store %arg8[%c0_14, %c0_15], %29 {strides = array<i32>} : memref<104x128xf32, #tpu.memory_space<vmem>>, vector<104x128xf32>,
      %cst_16 = arith.constant 0x7F800000 : f32
      %31 = vector.broadcast %cst_16 : f32 to vector<104x128xf32>
      %c0_17 = arith.constant 0 : index
      %c0_18 = arith.constant 0 : index
      %32 = vector.load %arg9[%c0_17, %c0_18] : memref<104x128xf32, #tpu.memory_space<vmem>>, vector<104x128xf32>
      tpu.vector_store %arg9[%c0_17, %c0_18], %31 {strides = array<i32>} : memref<104x128xf32, #tpu.memory_space<vmem>>, vector<104x128xf32>,
      %c0_19 = arith.constant 0 : index
      %c0_20 = arith.constant 0 : index
      %33 = vector.load %arg3[%c0_19, %c0_20] : memref<104x128xf32, #tpu.memory_space<vmem>>, vector<104x128xf32>
      %c0_21 = arith.constant 0 : index
      %c0_22 = arith.constant 0 : index
      %34 = vector.load %arg4[%c0_21, %c0_22] : memref<128x128xf32, #tpu.memory_space<vmem>>, vector<128x128xf32>
      %cst_23 = arith.constant dense<0.000000e+00> : vector<104x128xf32>
      %35 = tpu.matmul %33, %34, %cst_23 {dimension_numbers = #tpu.dot_dimension_numbers<[1], [0], [0], [1], [0, 0, 1, 1], [], []>} : vector<104x128xf32>, vector<128x128xf32>, vector<104x128xf32> -> vector<104x128xf32>
      %c0_24 = arith.constant 0 : index
      %36 = memref.load %arg2[%c0_24] : memref<1xf32, #tpu.memory_space<smem>>
      %37 = vector.broadcast %36 : f32 to vector<104x128xf32>
      %38 = arith.addf %35, %37 : vector<104x128xf32>
      %c0_25 = arith.constant 0 : index
      %c0_26 = arith.constant 0 : index
      %39 = vector.load %arg7[%c0_25, %c0_26] : memref<104x128xf32, #tpu.memory_space<vmem>>, vector<104x128xf32>
      tpu.vector_store %arg7[%c0_25, %c0_26], %38 {strides = array<i32>} : memref<104x128xf32, #tpu.memory_space<vmem>>, vector<104x128xf32>,
    } else {
    }
    %c0 = arith.constant 0 : index
    %c0_1 = arith.constant 0 : index
    %3 = vector.load %arg5[%c0, %c0_1] : memref<104x256xf32, #tpu.memory_space<vmem>>, vector<104x256xf32>
    %c256_i32 = arith.constant 256 : i32
    %4 = arith.muli %arg1, %c256_i32 : i32
    %5 = tpu.iota {dimensions = array<i32: 1>} : vector<104x256xi32>
    %6 = vector.broadcast %4 : i32 to vector<104x256xi32>
    %7 = arith.addi %6, %5 : vector<104x256xi32>
    %c200_i32 = arith.constant 200 : i32
    %8 = vector.broadcast %c200_i32 : i32 to vector<104x256xi32>
    %9 = arith.cmpi slt, %7, %8 : vector<104x256xi32>
    %cst = arith.constant 0xFF800000 : f32
    %10 = vector.broadcast %cst : f32 to vector<104x256xf32>
    %11 = arith.select %9, %3, %10 : vector<104x256xi1>, vector<104x256xf32>
    %cst_2 = arith.constant 0x7F800000 : f32
    %12 = vector.broadcast %cst_2 : f32 to vector<104x256xf32>
    %13 = arith.select %9, %3, %12 : vector<104x256xi1>, vector<104x256xf32>
    %c0_3 = arith.constant 0 : index
    %c0_4 = arith.constant 0 : index
    %14 = vector.load %arg8[%c0_3, %c0_4] : memref<104x128xf32, #tpu.memory_space<vmem>>, vector<104x128xf32>
    %15 = vector.extract_strided_slice %11 {offsets = [0, 0], sizes = [104, 128], strides = [1, 1]} : vector<104x256xf32> to vector<104x128xf32>
    %16 = arith.maximumf %14, %15 : vector<104x128xf32>
    %17 = vector.extract_strided_slice %11 {offsets = [0, 128], sizes = [104, 128], strides = [1, 1]} : vector<104x256xf32> to vector<104x128xf32>
    %18 = arith.maximumf %16, %17 : vector<104x128xf32>
    %c0_5 = arith.constant 0 : index
    %c0_6 = arith.constant 0 : index
    %19 = vector.load %arg8[%c0_5, %c0_6] : memref<104x128xf32, #tpu.memory_space<vmem>>, vector<104x128xf32>
    tpu.vector_store %arg8[%c0_5, %c0_6], %18 {strides = array<i32>} : memref<104x128xf32, #tpu.memory_space<vmem>>, vector<104x128xf32>,
    %c0_7 = arith.constant 0 : index
    %c0_8 = arith.constant 0 : index
    %20 = vector.load %arg9[%c0_7, %c0_8] : memref<104x128xf32, #tpu.memory_space<vmem>>, vector<104x128xf32>
    %21 = vector.extract_strided_slice %13 {offsets = [0, 0], sizes = [104, 128], strides = [1, 1]} : vector<104x256xf32> to vector<104x128xf32>
    %22 = arith.minimumf %20, %21 : vector<104x128xf32>
    %23 = vector.extract_strided_slice %13 {offsets = [0, 128], sizes = [104, 128], strides = [1, 1]} : vector<104x256xf32> to vector<104x128xf32>
    %24 = arith.minimumf %22, %23 : vector<104x128xf32>
    %c0_9 = arith.constant 0 : index
    %c0_10 = arith.constant 0 : index
    %25 = vector.load %arg9[%c0_9, %c0_10] : memref<104x128xf32, #tpu.memory_space<vmem>>, vector<104x128xf32>
    tpu.vector_store %arg9[%c0_9, %c0_10], %24 {strides = array<i32>} : memref<104x128xf32, #tpu.memory_space<vmem>>, vector<104x128xf32>,
    %c0_i32_11 = arith.constant 0 : i32
    %26 = arith.cmpi eq, %arg1, %c0_i32_11 : i32
    %27 = arith.extui %26 : i1 to i32
    %c0_i32_12 = arith.constant 0 : i32
    %28 = arith.cmpi ne, %27, %c0_i32_12 : i32
    scf.if %28 {
      %c0_13 = arith.constant 0 : index
      %c0_14 = arith.constant 0 : index
      %29 = vector.load %arg7[%c0_13, %c0_14] : memref<104x128xf32, #tpu.memory_space<vmem>>, vector<104x128xf32>
      %c0_15 = arith.constant 0 : index
      %c0_16 = arith.constant 0 : index
      %30 = vector.load %arg8[%c0_15, %c0_16] : memref<104x128xf32, #tpu.memory_space<vmem>>, vector<104x128xf32>
      %cst_17 = arith.constant dense<0xFF800000> : vector<104xf32>
      %31 = vector.multi_reduction <maximumf>, %30, %cst_17 [1] : vector<104x128xf32> to vector<104xf32>
      %32 = vector.shape_cast %31 : vector<104xf32> to vector<104x1xf32>
      %33 = vector.broadcast %32 : vector<104x1xf32> to vector<104x128xf32>
      %34 = arith.mulf %29, %33 : vector<104x128xf32>
      %c0_18 = arith.constant 0 : index
      %c0_19 = arith.constant 0 : index
      %35 = vector.load %arg9[%c0_18, %c0_19] : memref<104x128xf32, #tpu.memory_space<vmem>>, vector<104x128xf32>
      %cst_20 = arith.constant dense<0x7F800000> : vector<104xf32>
      %36 = vector.multi_reduction <minimumf>, %35, %cst_20 [1] : vector<104x128xf32> to vector<104xf32>
      %37 = vector.shape_cast %36 : vector<104xf32> to vector<104x1xf32>
      %38 = vector.broadcast %37 : vector<104x1xf32> to vector<104x128xf32>
      %39 = arith.mulf %29, %38 : vector<104x128xf32>
      %40 = arith.maximumf %34, %39 : vector<104x128xf32>
      %cst_21 = arith.constant 0.000000e+00 : f32
      %41 = vector.broadcast %cst_21 : f32 to vector<104x128xf32>
      %42 = arith.maximumf %40, %41 : vector<104x128xf32>
      %c0_22 = arith.constant 0 : index
      %c0_23 = arith.constant 0 : index
      %43 = vector.load %arg6[%c0_22, %c0_23] : memref<104x128xf32, #tpu.memory_space<vmem>>, vector<104x128xf32>
      tpu.vector_store %arg6[%c0_22, %c0_23], %42 {strides = array<i32>} : memref<104x128xf32, #tpu.memory_space<vmem>>, vector<104x128xf32>,
    } else {
    }
    return
  }
  func.func @transform_0(%arg0: i32, %arg1: i32) -> i32 {
    %c0_i32 = arith.constant 0 : i32
    %c0_i32_0 = arith.constant 0 : i32
    return %c0_i32 : i32
  }
  func.func @transform_1(%arg0: i32, %arg1: i32) -> (i32, i32) {
    %c0_i32 = arith.constant 0 : i32
    %c0_i32_0 = arith.constant 0 : i32
    return %arg0, %c0_i32 : i32, i32
  }
  func.func @transform_2(%arg0: i32, %arg1: i32) -> (i32, i32) {
    %c0_i32 = arith.constant 0 : i32
    %c0_i32_0 = arith.constant 0 : i32
    %c0_i32_1 = arith.constant 0 : i32
    return %c0_i32, %c0_i32_0 : i32, i32
  }
  func.func @transform_3(%arg0: i32, %arg1: i32) -> (i32, i32) {
    %c0_i32 = arith.constant 0 : i32
    return %arg0, %arg1 : i32, i32
  }
  func.func @transform_4(%arg0: i32, %arg1: i32) -> (i32, i32) {
    %c0_i32 = arith.constant 0 : i32
    %c0_i32_0 = arith.constant 0 : i32
    return %arg0, %c0_i32 : i32, i32
  }
}

</mosaic_0001>

<bundles_post_ra>
// kernel: tpu_custom_call.1
= control target key start
LH: loop header
LB: loop body
LE: loop exit
PB: predicated region body
PF: predicated region fallthrough
CT: control target
= control target key end

     0   :  { %s2017_s0 = inlined_call_operand.<no memory space> [shape: f32[1], index: 0, kind: input, shape index: {}]   ;;  %s2018_s1 = inlined_call_operand.hbm [shape: f32[200,128], index: 1, kind: input, shape index: {}]   ;;  %s2019_s2 = inlined_call_operand.hbm [shape: f32[128,128], index: 2, kind: input, shape index: {}]   ;;  %s2020_s3 = inlined_call_operand.hbm [shape: f32[200,200], index: 3, kind: input, shape index: {}]   ;;  %s2021_s4 = inlined_call_operand.hbm [shape: f32[200,128], index: 4, kind: output, shape index: {}]  }
   0x1   :  { %2024 = sst [smem:[#allocation17_spill]] %s2018_s1 }
   0x2   :  { %9 = sst [smem:[#allocation5]] %s2017_s0 }
   0x3   :  { %10 = vsyncpa [#allocation7], 0 }
   0x4   :  { %12 = vsyncpa [#allocation7 + $0x1], 0 }
   0x5   :  { %13 = vsyncpa [#allocation10], 0 }
   0x6   :  { %14 = vsyncpa [#allocation8], 0 }
   0x7   :  { %16 = vsyncpa [#allocation8 + $0x1], 0  ;;  %s1459_s17 = smov 0   ;;  %s1461_s18 = smov 0  }
   0x8   :  { %s1463_s19 = smov 0   ;;  %s1465_s20 = smov 0  }
   0x9   :  { %s1467_s21 = smov 0   ;;  %s1469_s22 = smov 0  }
   0xa LB: > { %s1490_s0 = sadd.s32 4294967295, %s1415_s22   ;;  %s1005_s23 = sadd.s32 4294967294, %s1415_s22   ;;  %s1415_s22 = sphi %s1469_s22, %s22_s22   ;;  %s1411_s21 = sphi %s1467_s21, %s2039_s21   ;;  %s1407_s20 = sphi %s1465_s20, %s2038_s20   ;;  %s1403_s19 = sphi %s1463_s19, %s2037_s19   ;;  %s1399_s18 = sphi %s1461_s18, %s2036_s18   ;;  %s1395_s17 = sphi %s1459_s17, %s2035_s17  }
   0xb   : > { %s34_s24 = sadd.s32 1, %s1411_s21  ;;  %s62_s25 = sadd.s32 1, %s1403_s19 }
   0xc   : > { %p36_p0 = scmp.ge.s32.totalorder %s34_s24, 2  ;;  %p69_p1 = scmp.ne.s32.totalorder %s1403_s19, %s1399_s18 }
   0xd   : > { %p70_p2 = scmp.eq.s32.totalorder %s1415_s22, 0  ;;  %p75_p3 = scmp.ne.s32.totalorder %s1399_s18, %s1395_s17 }
   0xe   : > { %s2041_s24 = smov (%p36_p0, %s34_s24), 0  ;;  %p76_p5 = scmp.eq.s32.totalorder %s1490_s0, 0 }
   0xf   : > { %p1502_p4 = por %p70_p2, %p69_p1  ;;  %s59_s27 = ssub.s32 %s1411_s21, %s2041_s24 }
  0x10   : > { %p148_p6 = scmp.eq.s32.totalorder %s1490_s0, 1  ;;  %p60_p7 = scmp.eq.s32.totalorder %s59_s27, 0 }
  0x11   : > { %p1512_p8 = por %p76_p5, %p75_p3  ;;  %p154_p10 = scmp.eq.s32.totalorder %s1005_s23, 1 }
  0x12   : > { %p1516_p9 = por %p148_p6, %p69_p1  ;;  %p1006_p12 = scmp.ge.s32.totalorder %s1415_s22, 1 }
  0x13   : > { %s2026_s28 = scalar_select %p1512_p8, 1, 0 }
  0x14   : > { %s2027_s29 = scalar_select %p1516_p9, 1, 0 }
  0x15   : > { %s1521_s30 = scalar_select %p60_p7, %s1403_s19, %s62_s25  }
  0x16   : > { %p1523_p11 = por %p154_p10, %p75_p3  ;;  %p161_p13 = scmp.lt.s32.totalorder %s1415_s22, 3 }
  0x17   : > { %s1417_s7 = smov [#allocation9]  }
  0x18   : > { %s2028_s5 = scalar_select %p1523_p11, 1, 0 }
  0x19   : > { %p1529_p0 = pnand %p1006_p12, %p161_p13  ;;  %s176_s8 = sshll.u32 %s1417_s7, 4  ;;  %s177_s8 = int_to_ptr.vmem [resolvable:$true] %s176_s8 }
  0x1a   : > { %s1260_s9 = scalar_lea.vmem %s177_s8, 2048  ;;  %p1268_p11 = scmp.lt.s32.totalorder %s177_s8, %s177_s8 }
  0x1b   : > { %p1179_p1 = pneg %p1529_p0  ;;  %p1261_p3 = scmp.ne.s32.totalorder %s177_s8, %s1260_s9 }
  0x1c   : > { %p1269_p9 = scmp.lt.s32.totalorder %s1260_s9, %s1260_s9 }
  0x1d   : > { %p1180_p2 = pnand %p1179_p1, %p76_p5 }
  0x1e   : > { %p1270_p8 = por %p1269_p9, %p1268_p11 }
  0x1f   : > { %p1251_p6 = pneg %p1180_p2 }
  0x21   : > { %p1263_p7 = pnand %p1261_p3, %p1251_p6 }
  0x23   : > { %p1264_p10 = pneg %p1263_p7 }
  0x25   : > { %p1271_p12 = pnand %p1270_p8, %p1264_p10 }
  0x27   : > { %1274 = shalt.err (!%p1271_p12)
}
  0x28   : > { %s1418_s10 = smov 128   ;;  %s1419_s11 = smov 8  }
  0x29   : > { %1182 = dma.hbm_to_vmem [thread:$0]  (!%p1180_p2), %s2019_s2, 2048, %s177_s8, [#allocation10], %s1418_s10, %s1418_s10, %s1419_s11  }
  0x2a   : > { %p2023_p13 = scmp.ge.s32.totalorder %s1415_s22, 2 }
  0x2c   : > { %186 = sbr.rel (%p2023_p13) target bundleno = 122 (0x7a), region = 24 }
  0x31   : > { %189 = sbr.rel (!%p1502_p4) target bundleno = 88 (0x58), region = 28  ;;  %s190_s14 = sand.u32 (%p1502_p4), 1, %s1415_s22  }
  0x32   : > { %s192_s15 = sand.u32 (%p1502_p4), 1, %s1403_s19   ;;  %s195_s23 = smul.u32 (%p1502_p4), 13, %s1411_s21 }
  0x33   : > { %s1168_s16 = smul.u32 (%p1502_p4), 104, %s192_s15  ;;  %s1551_s8 = scalar_lea.sflag (%p1502_p4), [#allocation7], %s190_s14 }
  0x34   : > { %s196_s25 = ssub.s32 (%p1502_p4), 25, %s195_s23 }
  0x35   : > { %p197_p8 = scmp.lt.s32.totalorder (%p1502_p4), %s196_s25, 13  ;;  %s194_s9 = scalar_lea.vmem (%p1502_p4), [#allocation6], %s1168_s16 }
  0x37   : > { %s2043_s25 = smov (!%p197_p8, %s196_s25), 13 }
  0x38   : > { %s1548_s27 = sshll.u32 %s2043_s25, 7 }
  0x39   : > { %s201_s7 = ssub.s32 1664, %s1548_s27 }
  0x3a   : > { %202 = vsyncadd %s1551_s8, %s201_s7  ;;  %p1010_p9 = scmp.ne.s32.totalorder %s1548_s27, 0  ;;  %s1030_s10 = smul.u32 1664, %s1411_s21 }
  0x3b   : > { %s207_s11 = sshll.u32 %s194_s9, 4  ;;  %s2030_s1 = sld [smem:[#allocation17_spill]]  ;;  %s1561_s11 = int_to_ptr.vmem [resolvable:$true] %s207_s11 }
  0x41   : > { %s1559_s15 = scalar_lea.hbm %s2030_s1, %s1030_s10  ;;  %s1279_s25 = scalar_lea.hbm %s2030_s1, 3200 }
  0x42   : > { %s1275_s14 = scalar_lea.hbm %s1559_s15, %s1548_s27 }
  0x43   : > { %p1276_p11 = scmp.ne.s32.totalorder %s1559_s15, %s1275_s14  ;;  %p1281_p6 = scmp.lt.s32.totalorder %s1279_s25, %s1275_s14 }
  0x45   : > { %p1277_p1 = pnand %p1276_p11, %p1010_p9 }
  0x47   : > { %p1278_p2 = pneg %p1277_p1 }
  0x49   : > { %p1283_p3 = pnand %p1281_p6, %p1278_p2 }
  0x4b   : > { %1286 = shalt.err (!%p1283_p3)
}
  0x4c   : > { %s1287_s7 = scalar_lea.vmem %s1561_s11, %s1548_s27  ;;  %s1420_s9 = smov [#allocation6]  }
  0x4d   : > { %p1288_p7 = scmp.ne.s32.totalorder %s1561_s11, %s1287_s7  ;;  %s1291_s10 = sshll.u32 %s1420_s9, 4  ;;  %s1292_s10 = int_to_ptr.vmem [resolvable:$false] %s1291_s10 }
  0x4e   : > { %s1293_s12 = scalar_lea.vmem %s1292_s10, 3328  ;;  %p1294_p8 = scmp.lt.s32.totalorder %s1561_s11, %s1292_s10 }
  0x4f   : > { %p1289_p10 = pnand %p1288_p7, %p1010_p9  ;;  %p1295_p11 = scmp.lt.s32.totalorder %s1293_s12, %s1287_s7 }
  0x51   : > { %p1290_p12 = pneg %p1289_p10  ;;  %p1296_p1 = por %p1295_p11, %p1294_p8 }
  0x53   : > { %p1297_p13 = pnand %p1296_p1, %p1290_p12 }
  0x55   : > { %1300 = shalt.err (!%p1297_p13)
}
  0x56   : > { %s1421_s13 = smov 128   ;;  %s1422_s14 = smov 8  }
  0x57   : > { %213 = dma.hbm_to_vmem [thread:$0]  (%p1010_p9), %s1559_s15, %s1548_s27, %s1561_s11, %s1551_s8, %s1421_s13, %s1421_s13, %s1422_s14  }
  0x58 PF: > { %216 = sbr.rel (!%p1502_p4) target bundleno = 122 (0x7a), region = 32  ;;  %s217_s16 = sand.u32 (%p1502_p4), 1, %s1415_s22  }
  0x59   : > { %s219_s23 = sand.u32 (%p1502_p4), 1, %s1403_s19   ;;  %s222_s7 = smul.u32 (%p1502_p4), 13, %s1411_s21 }
  0x5a   : > { %s1169_s25 = smul.u32 (%p1502_p4), 208, %s219_s23  ;;  %s1591_s1 = scalar_lea.sflag (%p1502_p4), [#allocation7], %s217_s16 }
  0x5b   : > { %s224_s9 = ssub.s32 (%p1502_p4), 25, %s222_s7 }
  0x5c   : > { %p225_p13 = scmp.lt.s32.totalorder (%p1502_p4), %s224_s9, 13  ;;  %s221_s27 = scalar_lea.vmem (%p1502_p4), [#allocation11], %s1169_s25 }
  0x5e   : > { %s2045_s9 = smov (!%p225_p13, %s224_s9), 13 }
  0x5f   : > { %s1588_s10 = sshll.u32 %s2045_s9, 8 }
  0x60   : > { %s230_s12 = ssub.s32 3328, %s1588_s10 }
  0x61   : > { %231 = vsyncadd %s1591_s1, %s230_s12  ;;  %p1016_p4 = scmp.ne.s32.totalorder %s1588_s10, 0  ;;  %s1035_s26 = smul.u32 3328, %s1411_s21 }
  0x62   : > { %s238_s8 = sshll.u32 %s221_s27, 4  ;;  %s1305_s25 = scalar_lea.hbm %s2020_s3, 6400  ;;  %s1601_s8 = int_to_ptr.vmem [resolvable:$true] %s238_s8 }
  0x63   : > { %s1599_s13 = scalar_lea.hbm %s2020_s3, %s1035_s26 }
  0x64   : > { %s1301_s14 = scalar_lea.hbm %s1599_s13, %s1588_s10 }
  0x65   : > { %p1302_p9 = scmp.ne.s32.totalorder %s1599_s13, %s1301_s14  ;;  %p1307_p3 = scmp.lt.s32.totalorder %s1305_s25, %s1301_s14 }
  0x67   : > { %p1303_p2 = pnand %p1302_p9, %p1016_p4 }
  0x69   : > { %p1304_p6 = pneg %p1303_p2 }
  0x6b   : > { %p1309_p7 = pnand %p1307_p3, %p1304_p6 }
  0x6d   : > { %1312 = shalt.err (!%p1309_p7)
}
  0x6e   : > { %s1313_s7 = scalar_lea.vmem %s1601_s8, %s1588_s10  ;;  %s1423_s9 = smov [#allocation11]  }
  0x6f   : > { %p1314_p10 = scmp.ne.s32.totalorder %s1601_s8, %s1313_s7  ;;  %s1317_s12 = sshll.u32 %s1423_s9, 4  ;;  %s1318_s12 = int_to_ptr.vmem [resolvable:$false] %s1317_s12 }
  0x70   : > { %s1319_s27 = scalar_lea.vmem %s1318_s12, 6656  ;;  %p1320_p11 = scmp.lt.s32.totalorder %s1601_s8, %s1318_s12 }
  0x71   : > { %p1315_p12 = pnand %p1314_p10, %p1016_p4  ;;  %p1321_p1 = scmp.lt.s32.totalorder %s1319_s27, %s1313_s7 }
  0x73   : > { %p1316_p8 = pneg %p1315_p12  ;;  %p1322_p13 = por %p1321_p1, %p1320_p11 }
  0x75   : > { %p1323_p9 = pnand %p1322_p13, %p1316_p8 }
  0x77   : > { %1326 = shalt.err (!%p1323_p9)
}
  0x78   : > { %s1424_s26 = smov 256   ;;  %s1425_s11 = smov 16  }
  0x79   : > { %244 = dma.hbm_to_vmem [thread:$0]  (%p1016_p4), %s1599_s13, %s1588_s10, %s1601_s8, %s1591_s1, %s1424_s26, %s1424_s26, %s1425_s11  }
  0x7a PF: > { %250 = sbr.rel (%p1529_p0) target bundleno = 421 (0x1a5), region = 36  ;;  %s252_s15 = sand.u32 (!%p1529_p0), 1, %s1490_s0  }
  0x7b   : > { %s1627_s14 = sand.u32 (!%p1529_p0), 1, %s1399_s18   ;;  %s253_s23 = scalar_lea.sflag (!%p1529_p0), [#allocation7], %s252_s15 }
  0x7c   : > { %s1170_s16 = smul.u32 (!%p1529_p0), 104, %s1627_s14  ;;  %p2031_p2 = scmp.ne.s32.totalorder (!%p1529_p0), %s2026_s28, 0 }
  0x7e   : > { %s1632_s25 = scalar_lea.vmem (!%p1529_p0), [#allocation6], %s1170_s16 }
  0x7f   : > { %1378 = dma.done.wait (%p2031_p2), %s253_s23, 1664  }
  0x80   : > { %1380 = vsyncadd (%p2031_p2), %s253_s23, 4294965632 }
  0x81   : > { %1382 = dma.done.wait (%p76_p5), [#allocation10], 2048  }
  0x82   : > { %1384 = vsyncadd (%p76_p5), [#allocation10], 4294965248  ;;  %s1171_s1 = smul.u32 208, %s1627_s14 }
  0x84   : > { %s1643_s6 = scalar_lea.vmem [#allocation11], %s1171_s1 }
  0x85   : > { %1386 = dma.done.wait (%p2031_p2), %s253_s23, 3328  }
  0x86   : > { %1388 = vsyncadd (%p2031_p2), %s253_s23, 4294963968  ;;  %v1426_v0 = vmov 0.0   ;;  %vm1427_vm0 = vmmov 0   ;;  %v374_v1 = vld [vmem:[#allocation9 + $0x78] sm:$0xff]  ;;  %v373_v2 = vld [vmem:[#allocation9 + $0x70] sm:$0xff]  ;;  %v547_v9 = vlaneseq  ;;  %s375_s0 = sld [smem:[#allocation5]] }
  0x87   : > { %1065 = vmatprep.subr.mxu0 %v1426_v0  ;;  %1136 = vmatprep.subr.mxu1 %v1426_v0  ;;  %v372_v3 = vld [vmem:[#allocation9 + $0x68] sm:$0xff]  ;;  %v371_v4 = vld [vmem:[#allocation9 + $0x60] sm:$0xff]  ;;  %v370_v5 = vld [vmem:[#allocation9 + $0x58] sm:$0xff]  ;;  %s1915_s28 = scalar_lea.vmem [#allocation12], %s1170_s16  ;;  %s871_s10 = scalar_lea.sflag [#allocation8], %s1627_s14 }
  0x88   : > { %1097 = vmatprep.mubr.msk.f32.mxu0 %vm1427_vm0, %v1426_v0  ;;  %1118 = vmatprep.mubr.msk.f32.mxu1 %vm1427_vm0, %v1426_v0  ;;  %v369_v6 = vld [vmem:[#allocation9 + $0x50] sm:$0xff]  ;;  %v368_v7 = vld [vmem:[#allocation9 + $0x48] sm:$0xff]  ;;  %v367_v8 = vld [vmem:[#allocation9 + $0x40] sm:$0xff]  ;;  %v548_v12 = vand.u32 127, %v547_v9  ;;  %p2032_p5 = scmp.ne.s32.totalorder %s2027_s29, 0 }
  0x89   : > { %1066 = vmatpush3.msra.mxu0 %v374_v1  ;;  %1152 = vmatpush3.msra.mxu1 %v374_v1  ;;  %v366_v10 = vld [vmem:[#allocation9 + $0x38] sm:$0xff]  ;;  %v365_v11 = vld [vmem:[#allocation9 + $0x30] sm:$0xff]  ;;  %v364_v13 = vld [vmem:[#allocation9 + $0x28] sm:$0xff]  ;;  %s878_s8 = smul.u32 (%p2032_p5), 13, %s1407_s20 }
  0x8a   : > { %1067 = vmatprep.subr.mxu0 %v1426_v0  ;;  %1137 = vmatprep.subr.mxu1 %v1426_v0  ;;  %v363_v14 = vld [vmem:[#allocation9 + $0x20] sm:$0xff]  ;;  %v1675_v15 = vadd.s32 128, %v548_v12  ;;  %v362_v16 = vld [vmem:[#allocation9 + $0x18] sm:$0xff]  ;;  %v361_v17 = vld [vmem:[#allocation9 + $0x10] sm:$0xff] }
  0x8b   : > { %1068 = vmatpush3.msra.mxu0 %v373_v2  ;;  %1153 = vmatpush3.msra.mxu1 %v373_v2  ;;  %v1682_v18 = vld [vmem:[%s1643_s6 + $0x8] sm:$0xff]  ;;  %v1691_v21 = vld [vmem:[%s1643_s6] sm:$0xff]  ;;  %v1705_v26 = vld [vmem:[%s1643_s6 + $0x18] sm:$0xff]  ;;  %s879_s13 = ssub.s32 (%p2032_p5), 25, %s878_s8 }
  0x8c   : > { %1069 = vmatprep.subr.mxu0 %v1426_v0  ;;  %1138 = vmatprep.subr.mxu1 %v1426_v0  ;;  %vm554_vm1 = vcmp.lt.s32.totalorder %v1675_v15, 200  ;;  %v1686_v19 = vld [vmem:[%s1643_s6 + $0x28] sm:$0xff]  ;;  %v1697_v23 = vld [vmem:[%s1643_s6 + $0x20] sm:$0xff]  ;;  %v1708_v27 = vld [vmem:[%s1643_s6 + $0x38] sm:$0xff]  ;;  %p880_p0 = scmp.lt.s32.totalorder (%p2032_p5), %s879_s13, 13 }
  0x8d   : > { %1070 = vmatpush3.msra.mxu0 %v372_v3  ;;  %1154 = vmatpush3.msra.mxu1 %v372_v3  ;;  %v360_v20 = vld [vmem:[#allocation9 + $0x8] sm:$0xff]  ;;  %v556_v22 = vsel %vm554_vm1, %v1682_v18, -inf  ;;  %v560_v24 = vsel %vm554_vm1, %v1686_v19, -inf  ;;  %v359_v25 = vld [vmem:[#allocation9] sm:$0xff]  ;;  %v346_v28 = vld [vmem:[%s1632_s25] sm:$0xff]  ;;  %v558_v33 = vsel %vm554_vm1, %v1705_v26, -inf }
  0x8e   : > { %1071 = vmatprep.subr.mxu0 %v1426_v0  ;;  %1139 = vmatprep.subr.mxu1 %v1426_v0  ;;  %v353_v29 = vld [vmem:[%s1632_s25 + $0x38] sm:$0xff]  ;;  %v633_v30 = vmax.f32 %v1691_v21, %v556_v22  ;;  %v635_v31 = vmax.f32 %v1697_v23, %v560_v24  ;;  %v1717_v32 = vld [vmem:[%s1643_s6 + $0x10] sm:$0xff]  ;;  %v562_v35 = vsel %vm554_vm1, %v1708_v27, -inf  ;;  %v1732_v37 = vld [vmem:[%s1643_s6 + $0x58] sm:$0xff] }
  0x8f   : > { %1072 = vmatpush3.msra.mxu0 %v371_v4  ;;  %1155 = vmatpush3.msra.mxu1 %v371_v4  ;;  %v1723_v34 = vld [vmem:[%s1643_s6 + $0x30] sm:$0xff]  ;;  %v1729_v36 = vld [vmem:[%s1643_s6 + $0x48] sm:$0xff]  ;;  %v634_v40 = vmax.f32 %v1717_v32, %v558_v33  ;;  %v1743_v42 = vld [vmem:[%s1643_s6 + $0x40] sm:$0xff]  ;;  %v566_v45 = vsel %vm554_vm1, %v1732_v37, -inf  ;;  %v586_v33 = vsel %vm554_vm1, %v1686_v19, inf }
  0x90   : > { %1073 = vmatprep.subr.mxu0 %v1426_v0  ;;  %1140 = vmatprep.subr.mxu1 %v1426_v0  ;;  %v347_v38 = vld [vmem:[%s1632_s25 + $0x8] sm:$0xff]  ;;  %v354_v39 = vld [vmem:[%s1632_s25 + $0x40] sm:$0xff]  ;;  %v636_v41 = vmax.f32 %v1723_v34, %v562_v35  ;;  %v564_v43 = vsel %vm554_vm1, %v1729_v36, -inf  ;;  %v348_v48 = vld [vmem:[%s1632_s25 + $0x10] sm:$0xff]  ;;  %v588_v35 = vsel %vm554_vm1, %v1708_v27, inf }
  0x91   : > { %1074 = vmatpush3.msra.mxu0 %v370_v5  ;;  %1156 = vmatpush3.msra.mxu1 %v370_v5  ;;  %v1749_v44 = vld [vmem:[%s1643_s6 + $0x50] sm:$0xff]  ;;  %v1755_v46 = vld [vmem:[%s1643_s6 + $0x68] sm:$0xff]  ;;  %v1758_v47 = vld [vmem:[%s1643_s6 + $0x78] sm:$0xff]  ;;  %v637_v50 = vmax.f32 %v1743_v42, %v564_v43 }
  0x92   : > { %1075 = vmatprep.subr.mxu0 %v1426_v0  ;;  %1141 = vmatprep.subr.mxu1 %v1426_v0  ;;  %v355_v49 = vld [vmem:[%s1632_s25 + $0x48] sm:$0xff]  ;;  %v638_v51 = vmax.f32 %v1749_v44, %v566_v45  ;;  %v1769_v52 = vld [vmem:[%s1643_s6 + $0x60] sm:$0xff]  ;;  %v568_v53 = vsel %vm554_vm1, %v1755_v46, -inf  ;;  %v570_v55 = vsel %vm554_vm1, %v1758_v47, -inf  ;;  %v1781_v56 = vld [vmem:[%s1643_s6 + $0x88] sm:$0xff] }
  0x93   : > { %1076 = vmatpush3.msra.mxu0 %v369_v6  ;;  %1157 = vmatpush3.msra.mxu1 %v369_v6  ;;  %v1775_v54 = vld [vmem:[%s1643_s6 + $0x70] sm:$0xff]  ;;  %v1784_v57 = vld [vmem:[%s1643_s6 + $0x98] sm:$0xff]  ;;  %v349_v58 = vld [vmem:[%s1632_s25 + $0x18] sm:$0xff]  ;;  %v639_v60 = vmax.f32 %v1769_v52, %v568_v53  ;;  %v572_v63 = vsel %vm554_vm1, %v1781_v56, -inf }
  0x94   : > { %1077 = vmatprep.subr.mxu0 %v1426_v0  ;;  %1142 = vmatprep.subr.mxu1 %v1426_v0  ;;  %v356_v59 = vld [vmem:[%s1632_s25 + $0x50] sm:$0xff]  ;;  %v640_v61 = vmax.f32 %v1775_v54, %v570_v55  ;;  %v1801_v1 = vld [vmem:[%s1643_s6 + $0x90] sm:$0xff]  ;;  %v574_v2 = vsel %vm554_vm1, %v1784_v57, -inf  ;;  %v541_v3 = vld [vmem:[%s1643_s6 + $0xa8] sm:$0xff] }
  0x95   : > { %1078 = vmatpush3.msra.mxu0 %v368_v7  ;;  %1158 = vmatpush3.msra.mxu1 %v368_v7  ;;  %v1795_v62 = vld [vmem:[%s1643_s6 + $0x80] sm:$0xff]  ;;  %v1808_v4 = vld [vmem:[%s1643_s6 + $0xb8] sm:$0xff]  ;;  %v350_v5 = vld [vmem:[%s1632_s25 + $0x20] sm:$0xff] }
  0x96   : > { %1079 = vmatprep.subr.mxu0 %v1426_v0  ;;  %1143 = vmatprep.subr.mxu1 %v1426_v0  ;;  %v357_v6 = vld [vmem:[%s1632_s25 + $0x58] sm:$0xff]  ;;  %v641_v7 = vmax.f32 %v1795_v62, %v572_v63  ;;  %v578_v12 = vsel %vm554_vm1, %v1808_v4, -inf }
  0x97   : > { %1080 = vmatpush3.msra.mxu0 %v367_v8  ;;  %1159 = vmatpush3.msra.mxu1 %v367_v8  ;;  %v642_v8 = vmax.f32 %v1801_v1, %v574_v2  ;;  %v540_v9 = vld [vmem:[%s1643_s6 + $0xa0] sm:$0xff] }
  0x98   : > { %1081 = vmatprep.subr.mxu0 %v1426_v0  ;;  %1144 = vmatprep.subr.mxu1 %v1426_v0  ;;  %v544_v22 = vld [vmem:[%s1643_s6 + $0xc0] sm:$0xff] }
  0x99   : > { %1082 = vmatpush3.msra.mxu0 %v366_v10  ;;  %1160 = vmatpush3.msra.mxu1 %v366_v10  ;;  %v576_v10 = vsel %vm554_vm1, %v541_v3, -inf }
  0x9a   : > { %1083 = vmatprep.subr.mxu0 %v1426_v0  ;;  %1145 = vmatprep.subr.mxu1 %v1426_v0 }
  0x9b   : > { %1084 = vmatpush3.msra.mxu0 %v365_v11  ;;  %1161 = vmatpush3.msra.mxu1 %v365_v11  ;;  %v542_v11 = vld [vmem:[%s1643_s6 + $0xb0] sm:$0xff] }
  0x9c   : > { %1085 = vmatprep.subr.mxu0 %v1426_v0  ;;  %1146 = vmatprep.subr.mxu1 %v1426_v0 }
  0x9d   : > { %1086 = vmatpush3.msra.mxu0 %v364_v13  ;;  %1162 = vmatpush3.msra.mxu1 %v364_v13  ;;  %v545_v13 = vld [vmem:[%s1643_s6 + $0xc8] sm:$0xff] }
  0x9e   : > { %1087 = vmatprep.subr.mxu0 %v1426_v0  ;;  %1147 = vmatprep.subr.mxu1 %v1426_v0  ;;  %v580_v24 = vsel %vm554_vm1, %v545_v13, -inf  ;;  %v606_v45 = vsel %vm554_vm1, %v545_v13, inf }
  0x9f   : > { %1088 = vmatpush3.msra.mxu0 %v363_v14  ;;  %1163 = vmatpush3.msra.mxu1 %v363_v14  ;;  %v351_v14 = vld [vmem:[%s1632_s25 + $0x28] sm:$0xff] }
  0xa0   : > { %1089 = vmatprep.subr.mxu0 %v1426_v0  ;;  %1148 = vmatprep.subr.mxu1 %v1426_v0 }
  0xa1   : > { %1090 = vmatpush3.msra.mxu0 %v362_v16  ;;  %1164 = vmatpush3.msra.mxu1 %v362_v16  ;;  %v358_v16 = vld [vmem:[%s1632_s25 + $0x60] sm:$0xff] }
  0xa2   : > { %1091 = vmatprep.subr.mxu0 %v1426_v0  ;;  %1149 = vmatprep.subr.mxu1 %v1426_v0 }
  0xa3   : > { %1092 = vmatpush3.msra.mxu0 %v361_v17  ;;  %1165 = vmatpush3.msra.mxu1 %v361_v17  ;;  %v643_v17 = vmax.f32 %v540_v9, %v576_v10 }
  0xa4   : > { %1093 = vmatprep.subr.mxu0 %v1426_v0  ;;  %1150 = vmatprep.subr.mxu1 %v1426_v0 }
  0xa5   : > { %1094 = vmatpush3.msra.mxu0 %v360_v20  ;;  %1166 = vmatpush3.msra.mxu1 %v360_v20  ;;  %v644_v20 = vmax.f32 %v542_v11, %v578_v12 }
  0xa6   : > { %1095 = vmatprep.subr.mxu0 %v1426_v0  ;;  %1151 = vmatprep.subr.mxu1 %v1426_v0 }
  0xa7   : > { %1096 = vmatpush3.msra.mxu0 %v359_v25  ;;  %1167 = vmatpush3.msra.mxu1 %v359_v25  ;;  %v582_v25 = vsel %vm554_vm1, %v1682_v18, inf }
  0xa8   : > { %1098 = vmatmul.mubr.f32.vlgmr.msra.gmra.mxu0 %v346_v28  ;;  %1119 = vmatmul.mubr.f32.vlgmr.msra.gmra.mxu1 %v353_v29  ;;  %v352_v28 = vld [vmem:[%s1632_s25 + $0x30] sm:$0xff]  ;;  %v645_v29 = vmax.f32 %v544_v22, %v580_v24 }
  0xa9   : > { %1100 = vmatprep.mubr.msk.f32.mxu0 %vm1427_vm0, %v1426_v0  ;;  %1121 = vmatprep.mubr.msk.f32.mxu1 %vm1427_vm0, %v1426_v0 }
  0xaa   : > { %740 = vmax.xlane.f32.xlu0 %v633_v30  ;;  %744 = vmax.xlane.f32.xlu1 %v635_v31  ;;  %v685_v30 = vmin.f32 %v1691_v21, %v582_v25  ;;  %v584_v31 = vsel %vm554_vm1, %v1705_v26, inf  ;;  %v590_v21 = vsel %vm554_vm1, %v1729_v36, inf  ;;  %v688_v26 = vmin.f32 %v1723_v34, %v588_v35 }
  0xab   : > { %v686_v18 = vmin.f32 %v1717_v32, %v584_v31  ;;  %v689_v19 = vmin.f32 %v1743_v42, %v590_v21  ;;  %v592_v32 = vsel %vm554_vm1, %v1732_v37, inf  ;;  %v596_v34 = vsel %vm554_vm1, %v1758_v47, inf }
  0xac   : > { %1101 = vmatmul.mubr.f32.gmra.mxu0 %v347_v38  ;;  %1122 = vmatmul.mubr.f32.gmra.mxu1 %v354_v39  ;;  %v690_v27 = vmin.f32 %v1749_v44, %v592_v32  ;;  %v598_v38 = vsel %vm554_vm1, %v1781_v56, inf  ;;  %v692_v37 = vmin.f32 %v1775_v54, %v596_v34  ;;  %v604_v44 = vsel %vm554_vm1, %v1808_v4, inf }
  0xad   : > { %1103 = vmatprep.mubr.msk.f32.mxu0 %vm1427_vm0, %v1426_v0  ;;  %1124 = vmatprep.mubr.msk.f32.mxu1 %vm1427_vm0, %v1426_v0  ;;  %v693_v39 = vmin.f32 %v1795_v62, %v598_v38  ;;  %v697_v47 = vmin.f32 %v544_v22, %v606_v45 }
  0xae   : > { %742 = vmax.xlane.f32.xlu0 %v634_v40  ;;  %746 = vmax.xlane.f32.xlu1 %v636_v41  ;;  %v600_v40 = vsel %vm554_vm1, %v1784_v57, inf  ;;  %v602_v41 = vsel %vm554_vm1, %v541_v3, inf  ;;  %v1905_v3 = vstv %s375_s0 }
  0xaf   : > { %v694_v42 = vmin.f32 %v1801_v1, %v600_v40  ;;  %v695_v43 = vmin.f32 %v540_v9, %v602_v41 }
  0xb0   : > { %1104 = vmatmul.mubr.f32.gmra.mxu0 %v348_v48  ;;  %1125 = vmatmul.mubr.f32.gmra.mxu1 %v355_v49 }
  0xb1   : > { %1106 = vmatprep.mubr.msk.f32.mxu0 %vm1427_vm0, %v1426_v0  ;;  %1127 = vmatprep.mubr.msk.f32.mxu1 %vm1427_vm0, %v1426_v0 }
  0xb2   : > { %748 = vmax.xlane.f32.xlu0 %v637_v50  ;;  %750 = vmax.xlane.f32.xlu1 %v638_v51 }
  0xb4   : > { %1107 = vmatmul.mubr.f32.gmra.mxu0 %v349_v58  ;;  %1128 = vmatmul.mubr.f32.gmra.mxu1 %v356_v59 }
  0xb5   : > { %1109 = vmatprep.mubr.msk.f32.mxu0 %vm1427_vm0, %v1426_v0  ;;  %1130 = vmatprep.mubr.msk.f32.mxu1 %vm1427_vm0, %v1426_v0 }
  0xb6   : > { %752 = vmax.xlane.f32.xlu0 %v639_v60  ;;  %754 = vmax.xlane.f32.xlu1 %v640_v61 }
  0xb8   : > { %1110 = vmatmul.mubr.f32.gmra.mxu0 %v350_v5  ;;  %1131 = vmatmul.mubr.f32.gmra.mxu1 %v357_v6 }
  0xb9   : > { %1112 = vmatprep.mubr.msk.f32.mxu0 %vm1427_vm0, %v1426_v0  ;;  %1133 = vmatprep.mubr.msk.f32.mxu1 %vm1427_vm0, %v1426_v0 }
  0xba   : > { %756 = vmax.xlane.f32.xlu0 %v641_v7  ;;  %758 = vmax.xlane.f32.xlu1 %v642_v8 }
  0xbc   : > { %1113 = vmatmul.mubr.f32.gmra.mxu0 %v351_v14  ;;  %1134 = vmatmul.mubr.f32.gmra.mxu1 %v358_v16 }
  0xbd   : > { %1115 = vmatprep.mubr.msk.f32.mxu0 %vm1427_vm0, %v1426_v0  ;;  %v687_v0 = vmin.f32 %v1697_v23, %v586_v33  ;;  %v594_v23 = vsel %vm554_vm1, %v1755_v46, inf  ;;  %v696_v46 = vmin.f32 %v542_v11, %v604_v44 }
  0xbe   : > { %760 = vmax.xlane.f32.xlu0 %v643_v17  ;;  %762 = vmax.xlane.f32.xlu1 %v644_v20  ;;  %v691_v36 = vmin.f32 %v1769_v52, %v594_v23 }
  0xc0   : > { %1116 = vmatmul.mubr.f32.gmra.mxu0 %v352_v28 }
  0xc2   : > { %764 = vmax.xlane.f32.xlu0 %v645_v29  ;;  %792 = vmin.xlane.f32.xlu1 %v685_v30 }
  0xc6   : > { %794 = vmin.xlane.f32.xlu0 %v686_v18  ;;  %796 = vmin.xlane.f32.xlu1 %v687_v0 }
  0xca   : > { %798 = vmin.xlane.f32.xlu0 %v688_v26  ;;  %800 = vmin.xlane.f32.xlu1 %v689_v19 }
  0xce   : > { %802 = vmin.xlane.f32.xlu0 %v690_v27  ;;  %804 = vmin.xlane.f32.xlu1 %v691_v36 }
  0xd2   : > { %806 = vmin.xlane.f32.xlu0 %v692_v37  ;;  %808 = vmin.xlane.f32.xlu1 %v693_v39 }
  0xd6   : > { %810 = vmin.xlane.f32.xlu0 %v694_v42  ;;  %812 = vmin.xlane.f32.xlu1 %v695_v43 }
  0xda   : > { %814 = vmin.xlane.f32.xlu0 %v696_v46  ;;  %816 = vmin.xlane.f32.xlu1 %v697_v47 }
 0x133   : > { %v741_v48 = vpop.xlane.xlu0 %740  ;;  %v745_v49 = vpop.xlane.xlu1 %744 }
 0x137   : > { %v743_v50 = vpop.xlane.xlu0 %742  ;;  %v1885_v51 = vpop.xlane.xlu1 %746 }
 0x13b   : > { %v1887_v52 = vpop.xlane.xlu0 %748  ;;  %v1889_v53 = vpop.xlane.xlu1 %750 }
 0x13f   : > { %v1891_v54 = vpop.xlane.xlu0 %752  ;;  %v755_v55 = vpop.xlane.xlu1 %754 }
 0x143   : > { %v757_v15 = vpop.xlane.xlu0 %756  ;;  %v759_v56 = vpop.xlane.xlu1 %758 }
 0x147   : > { %v1893_v57 = vpop.xlane.xlu0 %760  ;;  %v1895_v58 = vpop.xlane.xlu1 %762 }
 0x14b   : > { %v1897_v59 = vpop.xlane.xlu0 %764  ;;  %v793_v60 = vpop.xlane.xlu1 %792 }
 0x14f   : > { %v795_v61 = vpop.xlane.xlu0 %794  ;;  %v797_v62 = vpop.xlane.xlu1 %796 }
 0x153   : > { %v1899_v63 = vpop.xlane.xlu0 %798  ;;  %v1901_v1 = vpop.xlane.xlu1 %800 }
 0x157   : > { %v1903_v2 = vpop.xlane.xlu0 %802  ;;  %v1907_v4 = vpop.xlane.xlu1 %804 }
 0x15b   : > { %v807_v5 = vpop.xlane.xlu0 %806  ;;  %v809_v29 = vpop.xlane.xlu1 %808 }
 0x15f   : > { %v811_v34 = vpop.xlane.xlu0 %810 }
 0x168   : > { %v443_v6 = vpop.f32.mrf.mxu0  ;;  %v478_v7 = vpop.f32.mrf.mxu1 }
 0x169   : > { %v444_v8 = vadd.f32 %v443_v6, %v1905_v3  ;;  %v479_v9 = vadd.f32 %v478_v7, %v1905_v3 }
 0x16a   : > { %v1099_v10 = vpop.f32.mrf.mxu0  ;;  %v1120_v11 = vpop.f32.mrf.mxu1 }
 0x16b   : > { %v766_v12 = vmul.f32 %v741_v48, %v444_v8  ;;  %v818_v13 = vmul.f32 %v793_v60, %v444_v8  ;;  %v773_v14 = vmul.f32 %v755_v55, %v479_v9  ;;  %v825_v16 = vmul.f32 %v807_v5, %v479_v9 }
 0x16c   : > { %v448_v17 = vpop.f32.mrf.mxu0  ;;  %v483_v20 = vpop.f32.mrf.mxu1 }
 0x16d   : > { %v831_v22 = vmax.f32 %v766_v12, %v818_v13  ;;  %v838_v24 = vmax.f32 %v773_v14, %v825_v16  ;;  %v449_v25 = vadd.f32 %v448_v17, %v1905_v3  ;;  %v484_v28 = vadd.f32 %v483_v20, %v1905_v3  ;;  %v815_v14 = vpop.xlane.xlu0 %814 }
 0x16e   : > { %v1102_v30 = vpop.f32.mrf.mxu0  ;;  %v1123_v31 = vpop.f32.mrf.mxu1 }
 0x16f   : > { %v844_v33 = vmax.f32 %v831_v22, 0.0  ;;  %v851_v18 = vmax.f32 %v838_v24, 0.0  ;;  %v767_v0 = vmul.f32 %v743_v50, %v449_v25  ;;  %v819_v35 = vmul.f32 %v795_v61, %v449_v25 }
 0x170   : > { %v774_v21 = vmul.f32 %v757_v15, %v484_v28  ;;  %v826_v26 = vmul.f32 %v809_v29, %v484_v28  ;;  %v453_v19 = vpop.f32.mrf.mxu0  ;;  %v488_v32 = vpop.f32.mrf.mxu1 }
 0x171   : > { %857 = vst [vmem:[%s1915_s28] sm:$0xff] %v844_v33  ;;  %864 = vst [vmem:[%s1915_s28 + $0x38] sm:$0xff] %v851_v18  ;;  %v832_v23 = vmax.f32 %v767_v0, %v819_v35  ;;  %v454_v27 = vadd.f32 %v453_v19, %v1905_v3  ;;  %v489_v36 = vadd.f32 %v488_v32, %v1905_v3  ;;  %v813_v15 = vpop.xlane.xlu1 %812 }
 0x172   : > { %v839_v38 = vmax.f32 %v774_v21, %v826_v26  ;;  %v1105_v37 = vpop.f32.mrf.mxu0  ;;  %v1126_v39 = vpop.f32.mrf.mxu1 }
 0x173   : > { %v845_v40 = vmax.f32 %v832_v23, 0.0  ;;  %v768_v41 = vmul.f32 %v745_v49, %v454_v27  ;;  %v820_v42 = vmul.f32 %v797_v62, %v454_v27  ;;  %v775_v43 = vmul.f32 %v759_v56, %v489_v36 }
 0x174   : > { %v852_v44 = vmax.f32 %v839_v38, 0.0  ;;  %v827_v45 = vmul.f32 %v811_v34, %v489_v36  ;;  %v458_v46 = vpop.f32.mrf.mxu0  ;;  %v493_v47 = vpop.f32.mrf.mxu1 }
 0x175   : > { %858 = vst [vmem:[%s1915_s28 + $0x8] sm:$0xff] %v845_v40  ;;  %v833_v48 = vmax.f32 %v768_v41, %v820_v42  ;;  %v459_v50 = vadd.f32 %v458_v46, %v1905_v3  ;;  %v494_v55 = vadd.f32 %v493_v47, %v1905_v3  ;;  %v817_v18 = vpop.xlane.xlu1 %816 }
 0x176   : > { %865 = vst [vmem:[%s1915_s28 + $0x40] sm:$0xff] %v852_v44  ;;  %v840_v60 = vmax.f32 %v775_v43, %v827_v45  ;;  %v1108_v61 = vpop.f32.mrf.mxu0  ;;  %v1129_v5 = vpop.f32.mrf.mxu1 }
 0x177   : > { %v846_v49 = vmax.f32 %v833_v48, 0.0  ;;  %v769_v56 = vmul.f32 %v1885_v51, %v459_v50  ;;  %v821_v62 = vmul.f32 %v1899_v63, %v459_v50  ;;  %v776_v6 = vmul.f32 %v1893_v57, %v494_v55 }
 0x178   : > { %v853_v7 = vmax.f32 %v840_v60, 0.0  ;;  %v828_v8 = vmul.f32 %v813_v15, %v494_v55  ;;  %v463_v9 = vpop.f32.mrf.mxu0  ;;  %v498_v10 = vpop.f32.mrf.mxu1 }
 0x179   : > { %859 = vst [vmem:[%s1915_s28 + $0x10] sm:$0xff] %v846_v49  ;;  %v834_v11 = vmax.f32 %v769_v56, %v821_v62  ;;  %v464_v12 = vadd.f32 %v463_v9, %v1905_v3  ;;  %v499_v13 = vadd.f32 %v498_v10, %v1905_v3 }
 0x17a   : > { %866 = vst [vmem:[%s1915_s28 + $0x48] sm:$0xff] %v853_v7  ;;  %v841_v16 = vmax.f32 %v776_v6, %v828_v8  ;;  %v1111_v51 = vpop.f32.mrf.mxu0  ;;  %v1132_v17 = vpop.f32.mrf.mxu1 }
 0x17b   : > { %v847_v63 = vmax.f32 %v834_v11, 0.0  ;;  %v770_v57 = vmul.f32 %v1887_v52, %v464_v12  ;;  %v822_v20 = vmul.f32 %v1901_v1, %v464_v12  ;;  %v777_v22 = vmul.f32 %v1895_v58, %v499_v13 }
 0x17c   : > { %v854_v24 = vmax.f32 %v841_v16, 0.0  ;;  %v829_v25 = vmul.f32 %v815_v14, %v499_v13  ;;  %v468_v28 = vpop.f32.mrf.mxu0  ;;  %v503_v29 = vpop.f32.mrf.mxu1 }
 0x17d   : > { %860 = vst [vmem:[%s1915_s28 + $0x18] sm:$0xff] %v847_v63  ;;  %v835_v30 = vmax.f32 %v770_v57, %v822_v20  ;;  %v469_v31 = vadd.f32 %v468_v28, %v1905_v3  ;;  %v504_v33 = vadd.f32 %v503_v29, %v1905_v3 }
 0x17e   : > { %867 = vst [vmem:[%s1915_s28 + $0x50] sm:$0xff] %v854_v24  ;;  %v842_v0 = vmax.f32 %v777_v22, %v829_v25  ;;  %v1114_v52 = vpop.f32.mrf.mxu0  ;;  %v1135_v35 = vpop.f32.mrf.mxu1 }
 0x17f   : > { %v848_v1 = vmax.f32 %v835_v30, 0.0  ;;  %v771_v58 = vmul.f32 %v1889_v53, %v469_v31  ;;  %v823_v21 = vmul.f32 %v1903_v2, %v469_v31  ;;  %v778_v26 = vmul.f32 %v1897_v59, %v504_v33 }
 0x180   : > { %v855_v19 = vmax.f32 %v842_v0, 0.0  ;;  %v830_v32 = vmul.f32 %v817_v18, %v504_v33  ;;  %v473_v23 = vpop.f32.mrf.mxu0 }
 0x181   : > { %861 = vst [vmem:[%s1915_s28 + $0x20] sm:$0xff] %v848_v1  ;;  %v836_v27 = vmax.f32 %v771_v58, %v823_v21  ;;  %v474_v36 = vadd.f32 %v473_v23, %v1905_v3 }
 0x182   : > { %868 = vst [vmem:[%s1915_s28 + $0x58] sm:$0xff] %v855_v19  ;;  %v843_v34 = vmax.f32 %v778_v26, %v830_v32  ;;  %v1117_v38 = vpop.f32.mrf.mxu0 }
 0x183   : > { %v849_v37 = vmax.f32 %v836_v27, 0.0  ;;  %v772_v53 = vmul.f32 %v1891_v54, %v474_v36  ;;  %v824_v2 = vmul.f32 %v1907_v4, %v474_v36 }
 0x184   : > { %v856_v39 = vmax.f32 %v843_v34, 0.0 }
 0x185   : > { %862 = vst [vmem:[%s1915_s28 + $0x28] sm:$0xff] %v849_v37  ;;  %v837_v59 = vmax.f32 %v772_v53, %v824_v2  ;;  %877 = sbr.rel (!%p2032_p5) target bundleno = 421 (0x1a5), region = 60 }
 0x186   : > { %869 = vst [vmem:[%s1915_s28 + $0x60] sm:$0xff] %v856_v39 }
 0x187   : > { %v850_v40 = vmax.f32 %v837_v59, 0.0 }
 0x189   : > { %863 = vst [vmem:[%s1915_s28 + $0x30] sm:$0xff] %v850_v40 }
 0x18a   : > { %s2047_s13 = smov (!%p880_p0, %s879_s13), 13 }
 0x18b   : > { %s1954_s7 = sshll.u32 %s2047_s13, 7 }
 0x18c   : > { %s884_s9 = ssub.s32 1664, %s1954_s7 }
 0x18d   : > { %885 = vsyncadd %s871_s10, %s884_s9  ;;  %p1024_p4 = scmp.ne.s32.totalorder %s1954_s7, 0  ;;  %s1034_s29 = smul.u32 1664, %s1407_s20 }
 0x18e   : > { %s890_s12 = sshll.u32 %s1915_s28, 4  ;;  %s1428_s16 = smov [#allocation12]   ;;  %s1967_s12 = int_to_ptr.vmem [resolvable:$true] %s890_s12 }
 0x18f   : > { %s1965_s11 = scalar_lea.hbm %s2021_s4, %s1034_s29  ;;  %s1327_s15 = scalar_lea.vmem %s1967_s12, %s1954_s7 }
 0x190   : > { %p1328_p6 = scmp.ne.s32.totalorder %s1967_s12, %s1327_s15  ;;  %s1331_s23 = sshll.u32 %s1428_s16, 4  ;;  %s1332_s23 = int_to_ptr.vmem [resolvable:$false] %s1331_s23 }
 0x191   : > { %s1333_s20 = scalar_lea.vmem %s1332_s23, 3328  ;;  %p1334_p10 = scmp.lt.s32.totalorder %s1967_s12, %s1332_s23 }
 0x192   : > { %p1329_p3 = pnand %p1328_p6, %p1024_p4  ;;  %p1335_p12 = scmp.lt.s32.totalorder %s1333_s20, %s1327_s15 }
 0x194   : > { %p1330_p7 = pneg %p1329_p3  ;;  %p1336_p8 = por %p1335_p12, %p1334_p10 }
 0x196   : > { %p1337_p11 = pnand %p1336_p8, %p1330_p7 }
 0x198   : > { %1340 = shalt.err (!%p1337_p11)
}
 0x199   : > { %s1341_s25 = scalar_lea.hbm %s1965_s11, %s1954_s7  ;;  %s1345_s0 = scalar_lea.hbm %s2021_s4, 3200 }
 0x19a   : > { %p1342_p1 = scmp.ne.s32.totalorder %s1965_s11, %s1341_s25  ;;  %p1346_p2 = scmp.lt.s32.totalorder %s1965_s11, %s2021_s4 }
 0x19b   : > { %p1347_p5 = scmp.lt.s32.totalorder %s1345_s0, %s1341_s25 }
 0x19c   : > { %p1343_p13 = pnand %p1342_p1, %p1024_p4 }
 0x19d   : > { %p1348_p0 = por %p1347_p5, %p1346_p2 }
 0x19e   : > { %p1344_p9 = pneg %p1343_p13 }
 0x1a0   : > { %p1349_p6 = pnand %p1348_p0, %p1344_p9 }
 0x1a2   : > { %1352 = shalt.err (!%p1349_p6)
}
 0x1a3   : > { %s1429_s13 = smov 128   ;;  %s1430_s9 = smov 8  }
 0x1a4   : > { %896 = dma.vmem_to_hbm [thread:$0]  (%p1024_p4), %s1967_s12, %s1954_s7, %s1965_s11, %s871_s10, %s1429_s13, %s1429_s13, %s1430_s9  }
 0x1a5 PF: > { %s905_s29 = sand.u32 1, %s1395_s17   ;;  %p2033_p3 = scmp.ne.s32.totalorder %s2028_s5, 0 }
 0x1a6   : > { %p2034_p7 = scmp.ge.s32.totalorder %s1415_s22, 2  ;;  %s906_s27 = scalar_lea.sflag [#allocation8], %s905_s29 }
 0x1a8   : > { %p1184_p10 = pnand %p2034_p7, %p2033_p3 }
 0x1aa   : > { %p1185_p12 = pneg %p1184_p10 }
 0x1ac   : > { %1390 = dma.done.wait (%p1185_p12), %s906_s27, 1664  }
 0x1ad   : > { %1392 = vsyncadd (%p1185_p12), %s906_s27, 4294965632  ;;  %s22_s22 = sadd.s32 1, %s1415_s22   ;;  %s2035_s17 = smov %s1399_s18 }
 0x1ae   : > { %p19_p8 = scmp.ge.s32.totalorder %s22_s22, 4   ;;  %s2036_s18 = smov %s1403_s19 }
 0x1af   : > { %s2037_s19 = smov %s1521_s30  ;;  %s2038_s20 = smov %s1411_s21 }
 0x1b0   : > { %s2039_s21 = smov %s2041_s24  ;;  %21 = sbr.rel (!%p19_p8) target bundleno = 10 (0xa), region = 104 }
 0x1b5   :  { %911 = vsyncpa [#allocation7], 1 }
 0x1b6   :  { %913 = vsyncpa [#allocation7 + $0x1], 1 }
 0x1b7   :  { %914 = vsyncpa [#allocation10], 1 }
 0x1b8   :  { %915 = vsyncpa [#allocation8], 1 }
 0x1b9   :  { %917 = vsyncpa [#allocation8 + $0x1], 1 }

</bundles_post_ra>
